<compile_context>
chip_gen: v5e
topology: v5e:2x2
jax: 0.10.0
libtpu: 0.0.40
codegen_flags: <defaults>
</compile_context>

<pallas_src>
import jax
import jax.numpy as jnp
from jax.experimental import pallas as pl
from jax.experimental.pallas import tpu as pltpu

D_IN = 64
D_HID = 16
D_OUT = 1
MAX_TILE_B = 1024  # 1024 x 64 f32 tile = 256 KiB -> tiny even vs v7x 64 MiB VMEM.


def _round_up(n, m):
    return ((n + m - 1) // m) * m


def _mlp_kernel(x_ref, w1_ref, b1_ref, w2_ref, b2_ref, o_ref):
    # fc1: [TB, 64] @ [64, 16] on the MXU, f32 accumulation.
    h = jnp.dot(x_ref[...], w1_ref[...], preferred_element_type=jnp.float32)
    # Bias + ReLU in f32 on the VPU (b1 is a VMEM-resident [1, 16] row).
    h = jnp.maximum(h + b1_ref[...], 0.0)
    # fc2 (out_features == 1): VPU multiply + lane reduction instead of an MXU
    # matmul with N=1, K=16 (avoids a second MXU pipeline fill per tile).
    out = jnp.sum(h * w2_ref[...], axis=-1, keepdims=True) + b2_ref[...]
    o_ref[...] = out.astype(o_ref.dtype)


def net_forward(x, w1, b1, w2, b2, *, tile_b=MAX_TILE_B):
    """Fused fc1 -> ReLU -> fc2.

    Args:
      x:  [B, 64]  float32 or bfloat16
      w1: [64, 16] float32 or bfloat16 (transposed nn.Linear weight)
      b1: [16]
      w2: [16, 1]  (transposed nn.Linear weight)
      b2: [1]
    Returns:
      [B, 1] float32
    """
    B = x.shape[0]

    # Batch-row alignment: f32 packs 8 rows/vreg-sublane-group, bf16 packs 16.
    row_align = 8 if jnp.dtype(x.dtype).itemsize == 4 else 16

    # Pick a batch tile: large enough to amortize the ~0.35 us per-step
    # overhead, capped so small batches don't over-pad.
    tb = min(tile_b, _round_up(B, row_align))
    tb = _round_up(tb, row_align)
    Bp = _round_up(B, tb)
    if Bp != B:
        x = jnp.pad(x, ((0, Bp - B), (0, 0)))

    # Biases / second-layer weights kept in f32 (cheap: 16+16+1 values) so the
    # post-matmul elementwise math stays on the f32 VPU path (v5e-friendly).
    b1_row = b1.reshape(1, D_HID).astype(jnp.float32)
    w2_row = w2.reshape(D_HID, D_OUT).T.astype(jnp.float32)   # [1, 16]
    b2_sc = b2.reshape(1, 1).astype(jnp.float32)

    grid = (Bp // tb,)

    cost = pl.CostEstimate(
        flops=2 * Bp * D_IN * D_HID + 2 * Bp * D_HID,
        transcendentals=0,
        bytes_accessed=(Bp * D_IN * jnp.dtype(x.dtype).itemsize
                        + D_IN * D_HID * jnp.dtype(w1.dtype).itemsize
                        + Bp * D_OUT * 4),
    )

    out = pl.pallas_call(
        _mlp_kernel,
        out_shape=jax.ShapeDtypeStruct((Bp, D_OUT), jnp.float32),
        grid=grid,
        in_specs=[
            pl.BlockSpec((tb, D_IN), lambda i: (i, 0)),       # streamed x tiles
            pl.BlockSpec((D_IN, D_HID), lambda i: (0, 0)),    # VMEM-resident W1
            pl.BlockSpec((1, D_HID), lambda i: (0, 0)),       # VMEM-resident b1
            pl.BlockSpec((1, D_HID), lambda i: (0, 0)),       # VMEM-resident w2 row
            pl.BlockSpec((1, 1), lambda i: (0, 0)),           # VMEM-resident b2
        ],
        out_specs=pl.BlockSpec((tb, D_OUT), lambda i: (i, 0)),
        compiler_params=pltpu.CompilerParams(
            dimension_semantics=("parallel",),
        ),
        cost_estimate=cost,
    )(x, w1, b1_row, w2_row, b2_sc)

    return out[:B]


def _reference(x, w1, b1, w2, b2):
    h = jnp.maximum(x.astype(jnp.float32) @ w1.astype(jnp.float32) + b1, 0.0)
    return h @ w2 + b2


if __name__ == "__main__":
    key = jax.random.PRNGKey(0)
    k_x, k_w1, k_b1, k_w2, k_b2 = jax.random.split(key, 5)

    B = 8
    x = jax.random.normal(k_x, (B, D_IN), dtype=jnp.float32)

    # Deterministic parameter init (mimics nn.Linear's uniform(-1/sqrt(fan_in), ...)).
    lim1 = 1.0 / jnp.sqrt(jnp.float32(D_IN))
    lim2 = 1.0 / jnp.sqrt(jnp.float32(D_HID))
    w1 = jax.random.uniform(k_w1, (D_IN, D_HID), jnp.float32, -lim1, lim1)
    b1 = jax.random.uniform(k_b1, (D_HID,), jnp.float32, -lim1, lim1)
    w2 = jax.random.uniform(k_w2, (D_HID, D_OUT), jnp.float32, -lim2, lim2)
    b2 = jax.random.uniform(k_b2, (D_OUT,), jnp.float32, -lim2, lim2)

    ref = _reference(x, w1, b1, w2, b2)

    # f32 path (exact vs reference).
    out = jax.block_until_ready(net_forward(x, w1, b1, w2, b2))
    assert out.shape == (B, D_OUT), out.shape
    assert jnp.allclose(out, ref, atol=1e-5, rtol=1e-5), "f32 mismatch vs reference"

    # bf16 activations/weights (halves HBM traffic; MXU accumulates in f32).
    out_bf16 = jax.block_until_ready(
        net_forward(x.astype(jnp.bfloat16), w1.astype(jnp.bfloat16), b1, w2, b2))
    assert out_bf16.shape == (B, D_OUT), out_bf16.shape
    assert jnp.allclose(out_bf16, ref, atol=5e-2, rtol=5e-2), "bf16 mismatch vs reference"

    # Larger, non-tile-multiple batch: exercises the grid, double-buffered DMA
    # and the pad/slice path.
    B2 = 2500
    x2 = jax.random.normal(jax.random.PRNGKey(1), (B2, D_IN), dtype=jnp.float32)
    out2 = jax.block_until_ready(net_forward(x2, w1, b1, w2, b2))
    ref2 = _reference(x2, w1, b1, w2, b2)
    assert out2.shape == (B2, D_OUT), out2.shape
    assert jnp.allclose(out2, ref2, atol=1e-5, rtol=1e-5), "gridded mismatch vs reference"

    print("KERNEL_OK")
</pallas_src>

<mosaic_0001>
module attributes {stable_mosaic.version = 11 : i64} {
  func.func @_mlp_kernel(%arg0: i32, %arg1: memref<8x64xf32, #tpu.memory_space<vmem>>, %arg2: memref<64x16xf32, #tpu.memory_space<vmem>>, %arg3: memref<1x16xf32, #tpu.memory_space<vmem>>, %arg4: memref<1x16xf32, #tpu.memory_space<vmem>>, %arg5: memref<1x1xf32, #tpu.memory_space<vmem>>, %arg6: memref<8x1xf32, #tpu.memory_space<vmem>>) attributes {dimension_semantics = [#tpu.dimension_semantics<parallel>], iteration_bounds = array<i64: 1>, scalar_prefetch = 0 : i64, scratch_operands = 0 : i64, tpu.core_type = #tpu.core_type<tc>, window_params = [{transform_indices = @transform_0, window_bounds = array<i64: 8, 64>}, {pipeline_mode = #tpu.pipeline_mode<synchronous>, transform_indices = @transform_1, window_bounds = array<i64: 64, 16>}, {pipeline_mode = #tpu.pipeline_mode<synchronous>, transform_indices = @transform_2, window_bounds = array<i64: 1, 16>}, {pipeline_mode = #tpu.pipeline_mode<synchronous>, transform_indices = @transform_3, window_bounds = array<i64: 1, 16>}, {pipeline_mode = #tpu.pipeline_mode<synchronous>, transform_indices = @transform_4, window_bounds = array<i64: 1, 1>}, {transform_indices = @transform_5, window_bounds = array<i64: 8, 1>}]} {
    %c0 = arith.constant 0 : index
    %c0_0 = arith.constant 0 : index
    %0 = vector.load %arg1[%c0, %c0_0] : memref<8x64xf32, #tpu.memory_space<vmem>>, vector<8x64xf32>
    %c0_1 = arith.constant 0 : index
    %c0_2 = arith.constant 0 : index
    %1 = vector.load %arg2[%c0_1, %c0_2] : memref<64x16xf32, #tpu.memory_space<vmem>>, vector<64x16xf32>
    %cst = arith.constant dense<0.000000e+00> : vector<8x16xf32>
    %2 = tpu.matmul %0, %1, %cst {dimension_numbers = #tpu.dot_dimension_numbers<[1], [0], [0], [1], [0, 0, 1, 1], [], []>} : vector<8x64xf32>, vector<64x16xf32>, vector<8x16xf32> -> vector<8x16xf32>
    %c0_3 = arith.constant 0 : index
    %c0_4 = arith.constant 0 : index
    %3 = vector.load %arg3[%c0_3, %c0_4] : memref<1x16xf32, #tpu.memory_space<vmem>>, vector<1x16xf32>
    %4 = vector.broadcast %3 : vector<1x16xf32> to vector<8x16xf32>
    %5 = arith.addf %2, %4 : vector<8x16xf32>
    %cst_5 = arith.constant 0.000000e+00 : f32
    %6 = vector.broadcast %cst_5 : f32 to vector<8x16xf32>
    %7 = arith.maximumf %5, %6 : vector<8x16xf32>
    %c0_6 = arith.constant 0 : index
    %c0_7 = arith.constant 0 : index
    %8 = vector.load %arg4[%c0_6, %c0_7] : memref<1x16xf32, #tpu.memory_space<vmem>>, vector<1x16xf32>
    %9 = vector.broadcast %8 : vector<1x16xf32> to vector<8x16xf32>
    %10 = arith.mulf %7, %9 : vector<8x16xf32>
    %cst_8 = arith.constant dense<0.000000e+00> : vector<8xf32>
    %11 = vector.multi_reduction <add>, %10, %cst_8 [1] : vector<8x16xf32> to vector<8xf32>
    %12 = vector.shape_cast %11 : vector<8xf32> to vector<8x1xf32>
    %c0_9 = arith.constant 0 : index
    %c0_10 = arith.constant 0 : index
    %13 = vector.load %arg5[%c0_9, %c0_10] : memref<1x1xf32, #tpu.memory_space<vmem>>, vector<1x1xf32>
    %14 = vector.broadcast %13 : vector<1x1xf32> to vector<8x1xf32>
    %15 = arith.addf %12, %14 : vector<8x1xf32>
    %c0_11 = arith.constant 0 : index
    %c0_12 = arith.constant 0 : index
    %16 = vector.load %arg6[%c0_11, %c0_12] : memref<8x1xf32, #tpu.memory_space<vmem>>, vector<8x1xf32>
    tpu.vector_store %arg6[%c0_11, %c0_12], %15 {strides = array<i32>} : memref<8x1xf32, #tpu.memory_space<vmem>>, vector<8x1xf32>,
    return
  }
  func.func @transform_0(%arg0: i32) -> (i32, i32) {
    %c0_i32 = arith.constant 0 : i32
    %c0_i32_0 = arith.constant 0 : i32
    return %arg0, %c0_i32 : i32, i32
  }
  func.func @transform_1(%arg0: i32) -> (i32, i32) {
    %c0_i32 = arith.constant 0 : i32
    %c0_i32_0 = arith.constant 0 : i32
    %c0_i32_1 = arith.constant 0 : i32
    return %c0_i32, %c0_i32_0 : i32, i32
  }
  func.func @transform_2(%arg0: i32) -> (i32, i32) {
    %c0_i32 = arith.constant 0 : i32
    %c0_i32_0 = arith.constant 0 : i32
    %c0_i32_1 = arith.constant 0 : i32
    return %c0_i32, %c0_i32_0 : i32, i32
  }
  func.func @transform_3(%arg0: i32) -> (i32, i32) {
    %c0_i32 = arith.constant 0 : i32
    %c0_i32_0 = arith.constant 0 : i32
    %c0_i32_1 = arith.constant 0 : i32
    return %c0_i32, %c0_i32_0 : i32, i32
  }
  func.func @transform_4(%arg0: i32) -> (i32, i32) {
    %c0_i32 = arith.constant 0 : i32
    %c0_i32_0 = arith.constant 0 : i32
    %c0_i32_1 = arith.constant 0 : i32
    return %c0_i32, %c0_i32_0 : i32, i32
  }
  func.func @transform_5(%arg0: i32) -> (i32, i32) {
    %c0_i32 = arith.constant 0 : i32
    %c0_i32_0 = arith.constant 0 : i32
    return %arg0, %c0_i32 : i32, i32
  }
}

</mosaic_0001>

<bundles_post_ra>
// kernel: tpu_custom_call.1
= control target key start
LH: loop header
LB: loop body
LE: loop exit
PB: predicated region body
PF: predicated region fallthrough
CT: control target
= control target key end

     0   :  { %vm35_vm0 = vcmask 523264   ;;  %vm65_vm1 = vcmask 130048   ;;  %vm74_vm2 = vcmask 7168   ;;  %s153_s1 = inlined_call_operand.vmem [shape: f32[64,16], index: 1, kind: input, shape index: {}]   ;;  %s154_s2 = inlined_call_operand.vmem [shape: f32[1,16], index: 2, kind: input, shape index: {}]   ;;  %s155_s0 = inlined_call_operand.vmem [shape: f32[8,64], index: 0, kind: input, shape index: {}]   ;;  %s156_s3 = inlined_call_operand.vmem [shape: f32[1,16], index: 3, kind: input, shape index: {}]   ;;  %s157_s4 = inlined_call_operand.<no memory space> [shape: f32[1,1], index: 4, kind: input, shape index: {}]   ;;  %s158_s5 = inlined_call_operand.vmem [shape: f32[8,1], index: 5, kind: output, shape index: {}]  }
   0x1   :  { %v30_v0 = vld [vmem:[%s153_s1 + $0x38] sm:$0xff]  ;;  %v29_v1 = vld [vmem:[%s153_s1 + $0x30] sm:$0xff]  ;;  %v28_v2 = vld [vmem:[%s153_s1 + $0x28] sm:$0xff]  ;;  %v10_v9 = vstv %s157_s4 }
   0x2   :  { %47 = vmatpush.msra.mxu0 %v30_v0  ;;  %v27_v3 = vld [vmem:[%s153_s1 + $0x20] sm:$0xff]  ;;  %v26_v4 = vld [vmem:[%s153_s1 + $0x18] sm:$0xff]  ;;  %v25_v5 = vld [vmem:[%s153_s1 + $0x10] sm:$0xff]  ;;  %11 = vst [vmem:[#allocation2] sm:$0x1] %v10_v9 }
   0x3   :  { %v24_v6 = vld [vmem:[%s153_s1 + $0x8] sm:$0xff]  ;;  %v23_v7 = vld [vmem:[%s153_s1] sm:$0xff] }
   0x4   :  { %48 = vmatpush.msra.mxu0 %v29_v1  ;;  %v22_v8 = vld [vmem:[%s155_s0] sm:$0xff] }
   0x5   :  { %v81_v10 = vld [vmem:[%s154_s2] ss:$0 sm:$0xff] }
   0x6   :  { %49 = vmatpush.msra.mxu0 %v28_v2  ;;  %v82_v13 = vld [vmem:[%s156_s3] ss:$0 sm:$0xff] }
   0x8   :  { %50 = vmatpush.msra.mxu0 %v27_v3 }
   0x9   :  { %v83_v17 = vld [vmem:[#allocation2] ss:$0 sm:$0xff] }
   0xa   :  { %51 = vmatpush.msra.mxu0 %v26_v4 }
   0xc   :  { %52 = vmatpush.msra.mxu0 %v25_v5 }
   0xe   :  { %53 = vmatpush.msra.mxu0 %v24_v6 }
  0x10   :  { %54 = vmatpush.msra.mxu0 %v23_v7 }
  0x11   :  { %80 = vmatmul.msk.f32.vlgmr.msra.gmra.mxu0 %vm35_vm0, %v22_v8 }
  0x8e   :  { %v56_v11 = vpop.f32.mrf.mxu0 }
  0x8f   :  { %v57_v12 = vadd.f32 %v81_v10, %v56_v11 }
  0x91   :  { %v59_v14 = vmax.f32 %v57_v12, 0.0 }
  0x93   :  { %v64_v15 = vmul.f32 %v82_v13, %v59_v14 }
  0x95   :  { %v66_v16 = vsel %vm65_vm1, %v64_v15, 0.0 }
  0x96   :  { %67 = vadd.xlane.f32.xlu0 %v66_v16 }
 0x109   :  { %v68_v18 = vpop.xlane.xlu0 %67 }
 0x10a   :  { %v73_v19 = vadd.f32 %v83_v17, %v68_v18 }
 0x10c   :  { %75 = vst.msk [vmem:[%s158_s5] sm:$0xff] %vm74_vm2, %v73_v19 }

</bundles_post_ra>
